<compile_context>
chip_gen: v5e
topology: v5e:2x2
jax: 0.10.0
libtpu: 0.0.40
codegen_flags: <defaults>
</compile_context>

<pallas_src>
import jax
import jax.numpy as jnp
from jax.experimental import pallas as pl
from jax.experimental.pallas import tpu as pltpu


def matmul_tanh_kernel(x_ref, w_ref, o_ref):
    # y = x @ w on the MXU with f32 accumulation, then elementwise tanh (EUP).
    y = jnp.dot(x_ref[...], w_ref[...], preferred_element_type=jnp.float32)
    o_ref[...] = jnp.tanh(y).astype(o_ref.dtype)


def mlp_layer1(x: jax.Array, x1: jax.Array) -> jax.Array:
    """Pallas equivalent of MLP_Layer1.forward: tanh(x @ x1)."""
    M, K = x.shape
    K2, N = x1.shape
    assert K == K2, f"inner dims mismatch: {K} vs {K2}"

    return pl.pallas_call(
        matmul_tanh_kernel,
        out_shape=jax.ShapeDtypeStruct((M, N), x.dtype),
        # Whole-array blocks resident in VMEM; no grid, no pipeline machinery.
        in_specs=[
            pl.BlockSpec(memory_space=pltpu.MemorySpace.VMEM),
            pl.BlockSpec(memory_space=pltpu.MemorySpace.VMEM),
        ],
        out_specs=pl.BlockSpec(memory_space=pltpu.MemorySpace.VMEM),
        cost_estimate=pl.CostEstimate(
            flops=2 * M * K * N,
            transcendentals=M * N,
            bytes_accessed=4 * (M * K + K * N + M * N),
        ),
    )(x, x1)


if __name__ == "__main__":
    # Shapes taken directly from the module's @annotate_arguments:
    #   x  : [32, 784] float32
    #   x1 : [784, 50] float32
    key = jax.random.PRNGKey(0)
    kx, kw = jax.random.split(key)
    x = jax.random.normal(kx, (32, 784), dtype=jnp.float32)
    x1 = jax.random.normal(kw, (784, 50), dtype=jnp.float32) * 0.05

    fn = jax.jit(mlp_layer1)
    out = jax.block_until_ready(fn(x, x1))

    # Sanity check against plain-JAX reference.
    ref = jnp.tanh(x @ x1)
    assert out.shape == (32, 50), out.shape
    assert jnp.allclose(out, ref, atol=1e-5, rtol=1e-5), "mismatch vs reference"

    print("KERNEL_OK")
</pallas_src>

<mosaic_0001>
module attributes {stable_mosaic.version = 11 : i64} {
  func.func @matmul_tanh_kernel(%arg0: memref<32x784xf32, #tpu.memory_space<vmem>>, %arg1: memref<784x50xf32, #tpu.memory_space<vmem>>, %arg2: memref<32x50xf32, #tpu.memory_space<vmem>>) attributes {dimension_semantics = [], scalar_prefetch = 0 : i64, scratch_operands = 0 : i64, tpu.core_type = #tpu.core_type<tc>} {
    %c0 = arith.constant 0 : index
    %c0_0 = arith.constant 0 : index
    %0 = vector.load %arg0[%c0, %c0_0] : memref<32x784xf32, #tpu.memory_space<vmem>>, vector<32x784xf32>
    %c0_1 = arith.constant 0 : index
    %c0_2 = arith.constant 0 : index
    %1 = vector.load %arg1[%c0_1, %c0_2] : memref<784x50xf32, #tpu.memory_space<vmem>>, vector<784x50xf32>
    %cst = arith.constant dense<0.000000e+00> : vector<32x50xf32>
    %2 = tpu.matmul %0, %1, %cst {dimension_numbers = #tpu.dot_dimension_numbers<[1], [0], [0], [1], [0, 0, 1, 1], [], []>} : vector<32x784xf32>, vector<784x50xf32>, vector<32x50xf32> -> vector<32x50xf32>
    %3 = math.tanh %2 : vector<32x50xf32>
    %c0_3 = arith.constant 0 : index
    %c0_4 = arith.constant 0 : index
    %4 = vector.load %arg2[%c0_3, %c0_4] : memref<32x50xf32, #tpu.memory_space<vmem>>, vector<32x50xf32>
    tpu.vector_store %arg2[%c0_3, %c0_4], %3 {strides = array<i32>} : memref<32x50xf32, #tpu.memory_space<vmem>>, vector<32x50xf32>,
    return
  }
}

</mosaic_0001>

<bundles_post_ra>
// kernel: mlp_layer1.1
= control target key start
LH: loop header
LB: loop body
LE: loop exit
PB: predicated region body
PF: predicated region fallthrough
CT: control target
= control target key end

     0   :  { %s845_s0 = inlined_call_operand.vmem [shape: f32[32,784], index: 0, kind: input, shape index: {}]   ;;  %s846_s1 = inlined_call_operand.vmem [shape: f32[784,50], index: 1, kind: input, shape index: {}]   ;;  %s847_s2 = inlined_call_operand.hbm [shape: f32[32,50], index: 2, kind: output, shape index: {}]  }
   0x1   :  { %v55_v0 = vld [vmem:[%s846_s1 + $0x78] sm:$0xff]  ;;  %v54_v4 = vld [vmem:[%s846_s1 + $0x70] sm:$0xff]  ;;  %v53_v8 = vld [vmem:[%s846_s1 + $0x68] sm:$0xff] }
   0x2   :  { %v71_v1 = vld [vmem:[%s846_s1 + $0xf8] sm:$0xff]  ;;  %151 = vmatpush.msra.mxu0 %v55_v0  ;;  %v70_v5 = vld [vmem:[%s846_s1 + $0xf0] sm:$0xff]  ;;  %v69_v9 = vld [vmem:[%s846_s1 + $0xe8] sm:$0xff] }
   0x3   :  { %v87_v2 = vld [vmem:[%s846_s1 + $0x178] sm:$0xff]  ;;  %180 = vmatpush.msra.mxu1 %v71_v1  ;;  %v86_v6 = vld [vmem:[%s846_s1 + $0x170] sm:$0xff]  ;;  %v85_v10 = vld [vmem:[%s846_s1 + $0x168] sm:$0xff] }
   0x4   :  { %v103_v3 = vld [vmem:[%s846_s1 + $0x1f8] sm:$0xff]  ;;  %209 = vmatpush.msra.mxu2 %v87_v2  ;;  %v102_v7 = vld [vmem:[%s846_s1 + $0x1f0] sm:$0xff]  ;;  %152 = vmatpush.msra.mxu0 %v54_v4  ;;  %v101_v11 = vld [vmem:[%s846_s1 + $0x1e8] sm:$0xff] }
   0x5   :  { %238 = vmatpush.msra.mxu3 %v103_v3  ;;  %181 = vmatpush.msra.mxu1 %v70_v5  ;;  %v52_v12 = vld [vmem:[%s846_s1 + $0x60] sm:$0xff]  ;;  %v51_v16 = vld [vmem:[%s846_s1 + $0x58] sm:$0xff]  ;;  %v50_v20 = vld [vmem:[%s846_s1 + $0x50] sm:$0xff] }
   0x6   :  { %210 = vmatpush.msra.mxu2 %v86_v6  ;;  %v68_v13 = vld [vmem:[%s846_s1 + $0xe0] sm:$0xff]  ;;  %153 = vmatpush.msra.mxu0 %v53_v8  ;;  %v67_v17 = vld [vmem:[%s846_s1 + $0xd8] sm:$0xff]  ;;  %v66_v21 = vld [vmem:[%s846_s1 + $0xd0] sm:$0xff] }
   0x7   :  { %239 = vmatpush.msra.mxu3 %v102_v7  ;;  %182 = vmatpush.msra.mxu1 %v69_v9  ;;  %v84_v14 = vld [vmem:[%s846_s1 + $0x160] sm:$0xff]  ;;  %v83_v18 = vld [vmem:[%s846_s1 + $0x158] sm:$0xff]  ;;  %v82_v22 = vld [vmem:[%s846_s1 + $0x150] sm:$0xff] }
   0x8   :  { %v100_v15 = vld [vmem:[%s846_s1 + $0x1e0] sm:$0xff]  ;;  %211 = vmatpush.msra.mxu2 %v85_v10  ;;  %154 = vmatpush.msra.mxu0 %v52_v12  ;;  %v99_v19 = vld [vmem:[%s846_s1 + $0x1d8] sm:$0xff]  ;;  %v98_v23 = vld [vmem:[%s846_s1 + $0x1d0] sm:$0xff] }
   0x9   :  { %240 = vmatpush.msra.mxu3 %v101_v11  ;;  %183 = vmatpush.msra.mxu1 %v68_v13  ;;  %v49_v24 = vld [vmem:[%s846_s1 + $0x48] sm:$0xff]  ;;  %v48_v28 = vld [vmem:[%s846_s1 + $0x40] sm:$0xff]  ;;  %v47_v32 = vld [vmem:[%s846_s1 + $0x38] sm:$0xff] }
   0xa   :  { %212 = vmatpush.msra.mxu2 %v84_v14  ;;  %155 = vmatpush.msra.mxu0 %v51_v16  ;;  %v65_v25 = vld [vmem:[%s846_s1 + $0xc8] sm:$0xff]  ;;  %v64_v29 = vld [vmem:[%s846_s1 + $0xc0] sm:$0xff]  ;;  %v63_v33 = vld [vmem:[%s846_s1 + $0xb8] sm:$0xff] }
   0xb   :  { %241 = vmatpush.msra.mxu3 %v100_v15  ;;  %184 = vmatpush.msra.mxu1 %v67_v17  ;;  %v81_v26 = vld [vmem:[%s846_s1 + $0x148] sm:$0xff]  ;;  %v80_v30 = vld [vmem:[%s846_s1 + $0x140] sm:$0xff]  ;;  %v79_v34 = vld [vmem:[%s846_s1 + $0x138] sm:$0xff] }
   0xc   :  { %213 = vmatpush.msra.mxu2 %v83_v18  ;;  %156 = vmatpush.msra.mxu0 %v50_v20  ;;  %v97_v27 = vld [vmem:[%s846_s1 + $0x1c8] sm:$0xff]  ;;  %v96_v31 = vld [vmem:[%s846_s1 + $0x1c0] sm:$0xff]  ;;  %v95_v35 = vld [vmem:[%s846_s1 + $0x1b8] sm:$0xff] }
   0xd   :  { %242 = vmatpush.msra.mxu3 %v99_v19  ;;  %185 = vmatpush.msra.mxu1 %v66_v21  ;;  %v46_v36 = vld [vmem:[%s846_s1 + $0x30] sm:$0xff]  ;;  %v45_v40 = vld [vmem:[%s846_s1 + $0x28] sm:$0xff]  ;;  %v44_v44 = vld [vmem:[%s846_s1 + $0x20] sm:$0xff] }
   0xe   :  { %214 = vmatpush.msra.mxu2 %v82_v22  ;;  %157 = vmatpush.msra.mxu0 %v49_v24  ;;  %v62_v37 = vld [vmem:[%s846_s1 + $0xb0] sm:$0xff]  ;;  %v61_v41 = vld [vmem:[%s846_s1 + $0xa8] sm:$0xff]  ;;  %v60_v45 = vld [vmem:[%s846_s1 + $0xa0] sm:$0xff] }
   0xf   :  { %243 = vmatpush.msra.mxu3 %v98_v23  ;;  %186 = vmatpush.msra.mxu1 %v65_v25  ;;  %v78_v38 = vld [vmem:[%s846_s1 + $0x130] sm:$0xff]  ;;  %v77_v42 = vld [vmem:[%s846_s1 + $0x128] sm:$0xff]  ;;  %v76_v46 = vld [vmem:[%s846_s1 + $0x120] sm:$0xff] }
  0x10   :  { %215 = vmatpush.msra.mxu2 %v81_v26  ;;  %158 = vmatpush.msra.mxu0 %v48_v28  ;;  %v94_v39 = vld [vmem:[%s846_s1 + $0x1b0] sm:$0xff]  ;;  %v93_v43 = vld [vmem:[%s846_s1 + $0x1a8] sm:$0xff]  ;;  %v92_v47 = vld [vmem:[%s846_s1 + $0x1a0] sm:$0xff] }
  0x11   :  { %244 = vmatpush.msra.mxu3 %v97_v27  ;;  %187 = vmatpush.msra.mxu1 %v64_v29  ;;  %v43_v48 = vld [vmem:[%s846_s1 + $0x18] sm:$0xff]  ;;  %v42_v52 = vld [vmem:[%s846_s1 + $0x10] sm:$0xff]  ;;  %v41_v56 = vld [vmem:[%s846_s1 + $0x8] sm:$0xff] }
  0x12   :  { %216 = vmatpush.msra.mxu2 %v80_v30  ;;  %159 = vmatpush.msra.mxu0 %v47_v32  ;;  %v59_v49 = vld [vmem:[%s846_s1 + $0x98] sm:$0xff]  ;;  %v58_v53 = vld [vmem:[%s846_s1 + $0x90] sm:$0xff]  ;;  %v57_v57 = vld [vmem:[%s846_s1 + $0x88] sm:$0xff] }
  0x13   :  { %245 = vmatpush.msra.mxu3 %v96_v31  ;;  %188 = vmatpush.msra.mxu1 %v63_v33  ;;  %v75_v50 = vld [vmem:[%s846_s1 + $0x118] sm:$0xff]  ;;  %v74_v54 = vld [vmem:[%s846_s1 + $0x110] sm:$0xff]  ;;  %v73_v58 = vld [vmem:[%s846_s1 + $0x108] sm:$0xff] }
  0x14   :  { %217 = vmatpush.msra.mxu2 %v79_v34  ;;  %160 = vmatpush.msra.mxu0 %v46_v36  ;;  %v91_v51 = vld [vmem:[%s846_s1 + $0x198] sm:$0xff]  ;;  %v90_v55 = vld [vmem:[%s846_s1 + $0x190] sm:$0xff]  ;;  %v89_v59 = vld [vmem:[%s846_s1 + $0x188] sm:$0xff] }
  0x15   :  { %246 = vmatpush.msra.mxu3 %v95_v35  ;;  %189 = vmatpush.msra.mxu1 %v62_v37  ;;  %v40_v60 = vld [vmem:[%s846_s1] sm:$0xff]  ;;  %v13_v1 = vld [vmem:[%s845_s0 + $0x8] sm:$0xff]  ;;  %v14_v2 = vld [vmem:[%s845_s0 + $0x10] sm:$0xff] }
  0x16   :  { %218 = vmatpush.msra.mxu2 %v78_v38  ;;  %161 = vmatpush.msra.mxu0 %v45_v40  ;;  %v56_v61 = vld [vmem:[%s846_s1 + $0x80] sm:$0xff]  ;;  %v15_v3 = vld [vmem:[%s845_s0 + $0x18] sm:$0xff]  ;;  %v137_v4 = vld [vmem:[%s846_s1 + $0x308] sm:$0xff] }
  0x17   :  { %247 = vmatpush.msra.mxu3 %v94_v39  ;;  %190 = vmatpush.msra.mxu1 %v61_v41  ;;  %v72_v62 = vld [vmem:[%s846_s1 + $0x100] sm:$0xff]  ;;  %v119_v5 = vld [vmem:[%s846_s1 + $0x278] sm:$0xff]  ;;  %v118_v7 = vld [vmem:[%s846_s1 + $0x270] sm:$0xff] }
  0x18   :  { %219 = vmatpush.msra.mxu2 %v77_v42  ;;  %162 = vmatpush.msra.mxu0 %v44_v44  ;;  %v88_v63 = vld [vmem:[%s846_s1 + $0x180] sm:$0xff]  ;;  %v135_v6 = vld [vmem:[%s846_s1 + $0x2f8] sm:$0xff]  ;;  %v134_v9 = vld [vmem:[%s846_s1 + $0x2f0] sm:$0xff] }
  0x19   :  { %248 = vmatpush.msra.mxu3 %v93_v43  ;;  %191 = vmatpush.msra.mxu1 %v60_v45  ;;  %v12_v0 = vld [vmem:[%s845_s0] sm:$0xff]  ;;  %v117_v10 = vld [vmem:[%s846_s1 + $0x268] sm:$0xff] }
  0x1a   :  { %220 = vmatpush.msra.mxu2 %v76_v46  ;;  %163 = vmatpush.msra.mxu0 %v43_v48  ;;  %v136_v8 = vld [vmem:[%s846_s1 + $0x300] sm:$0xff]  ;;  %v133_v11 = vld [vmem:[%s846_s1 + $0x2e8] sm:$0xff] }
  0x1b   :  { %249 = vmatpush.msra.mxu3 %v92_v47  ;;  %192 = vmatpush.msra.mxu1 %v59_v49  ;;  %v116_v12 = vld [vmem:[%s846_s1 + $0x260] sm:$0xff] }
  0x1c   :  { %221 = vmatpush.msra.mxu2 %v75_v50  ;;  %164 = vmatpush.msra.mxu0 %v42_v52  ;;  %v20_v13 = vld [vmem:[%s845_s0 + $0x40] sm:$0xff] }
  0x1d   :  { %250 = vmatpush.msra.mxu3 %v91_v51  ;;  %193 = vmatpush.msra.mxu1 %v58_v53  ;;  %v132_v14 = vld [vmem:[%s846_s1 + $0x2e0] sm:$0xff] }
  0x1e   :  { %222 = vmatpush.msra.mxu2 %v74_v54  ;;  %165 = vmatpush.msra.mxu0 %v41_v56 }
  0x1f   :  { %251 = vmatpush.msra.mxu3 %v90_v55  ;;  %194 = vmatpush.msra.mxu1 %v57_v57 }
  0x20   :  { %223 = vmatpush.msra.mxu2 %v73_v58  ;;  %166 = vmatpush.msra.mxu0 %v40_v60 }
  0x21   :  { %252 = vmatpush.msra.mxu3 %v89_v59  ;;  %195 = vmatpush.msra.mxu1 %v56_v61 }
  0x22   :  { %224 = vmatpush.msra.mxu2 %v72_v62  ;;  %167 = vmatmul.f32.vlgmr.msra.gmra.mxu0 %v12_v0 }
  0x23   :  { %253 = vmatpush.msra.mxu3 %v88_v63  ;;  %196 = vmatmul.f32.vlgmr.msra.gmra.mxu1 %v13_v1 }
  0x24   :  { %225 = vmatmul.f32.vlgmr.msra.gmra.mxu2 %v14_v2  ;;  %254 = vmatmul.f32.vlgmr.msra.gmra.mxu3 %v15_v3 }
  0x25   :  { %339 = vmatpush.msrb.mxu2 %v137_v4  ;;  %267 = vmatpush.msrb.mxu0 %v119_v5 }
  0x26   :  { %385 = vmatpush.msrb.mxu3 %v119_v5  ;;  %296 = vmatpush.msrb.mxu1 %v135_v6 }
  0x27   :  { %268 = vmatpush.msrb.mxu0 %v118_v7  ;;  %340 = vmatpush.msrb.mxu2 %v136_v8 }
  0x28   :  { %386 = vmatpush.msrb.mxu3 %v118_v7  ;;  %297 = vmatpush.msrb.mxu1 %v134_v9 }
  0x29   :  { %269 = vmatpush.msrb.mxu0 %v117_v10 }
  0x2a   :  { %7 = vsyncpa [#allocation3], 0  ;;  %387 = vmatpush.msrb.mxu3 %v117_v10  ;;  %298 = vmatpush.msrb.mxu1 %v133_v11  ;;  %v19_v15 = vld [vmem:[%s845_s0 + $0x38] sm:$0xff]  ;;  %v21_v16 = vld [vmem:[%s845_s0 + $0x48] sm:$0xff]  ;;  %vm138_vm0 = vcmask 130048   ;;  %vm358_vm1 = vcmask 408576  }
  0x2b   :  { %270 = vmatpush.msrb.mxu0 %v116_v12  ;;  %199 = vmatmul.f32.gmra.mxu1 %v20_v13  ;;  %v22_v17 = vld [vmem:[%s845_s0 + $0x50] sm:$0xff]  ;;  %v115_v18 = vld [vmem:[%s846_s1 + $0x258] sm:$0xff]  ;;  %v113_v22 = vld [vmem:[%s846_s1 + $0x248] sm:$0xff]  ;;  %s369_s11 = sshll.u32 %s847_s2, 4  ;;  %s439_s12 = smov 128   ;;  %s370_s11 = int_to_ptr.hbm [resolvable:$true] %s369_s11 }
  0x2c   :  { %388 = vmatpush.msrb.mxu3 %v116_v12  ;;  %299 = vmatpush.msrb.mxu1 %v132_v14  ;;  %v131_v19 = vld [vmem:[%s846_s1 + $0x2d8] sm:$0xff]  ;;  %v114_v20 = vld [vmem:[%s846_s1 + $0x250] sm:$0xff]  ;;  %v129_v23 = vld [vmem:[%s846_s1 + $0x2c8] sm:$0xff]  ;;  %s440_s13 = smov 8  }
  0x2d   :  { %170 = vmatmul.f32.gmra.mxu0 %v19_v15  ;;  %228 = vmatmul.f32.gmra.mxu2 %v21_v16  ;;  %v130_v21 = vld [vmem:[%s846_s1 + $0x2d0] sm:$0xff]  ;;  %v112_v24 = vld [vmem:[%s846_s1 + $0x240] sm:$0xff]  ;;  %v27_v25 = vld [vmem:[%s845_s0 + $0x78] sm:$0xff] }
  0x2e   :  { %257 = vmatmul.f32.gmra.mxu3 %v22_v17  ;;  %271 = vmatpush.msrb.mxu0 %v115_v18  ;;  %v128_v26 = vld [vmem:[%s846_s1 + $0x2c0] sm:$0xff]  ;;  %v26_v27 = vld [vmem:[%s845_s0 + $0x70] sm:$0xff]  ;;  %v29_v29 = vld [vmem:[%s845_s0 + $0x88] sm:$0xff] }
  0x2f   :  { %389 = vmatpush.msrb.mxu3 %v115_v18  ;;  %300 = vmatpush.msrb.mxu1 %v131_v19  ;;  %v28_v28 = vld [vmem:[%s845_s0 + $0x80] sm:$0xff]  ;;  %v111_v30 = vld [vmem:[%s846_s1 + $0x238] sm:$0xff]  ;;  %v110_v32 = vld [vmem:[%s846_s1 + $0x230] sm:$0xff] }
  0x30   :  { %272 = vmatpush.msrb.mxu0 %v114_v20  ;;  %v127_v31 = vld [vmem:[%s846_s1 + $0x2b8] sm:$0xff]  ;;  %v126_v33 = vld [vmem:[%s846_s1 + $0x2b0] sm:$0xff]  ;;  %v109_v34 = vld [vmem:[%s846_s1 + $0x228] sm:$0xff] }
  0x31   :  { %390 = vmatpush.msrb.mxu3 %v114_v20  ;;  %301 = vmatpush.msrb.mxu1 %v130_v21  ;;  %v125_v35 = vld [vmem:[%s846_s1 + $0x2a8] sm:$0xff]  ;;  %v108_v36 = vld [vmem:[%s846_s1 + $0x220] sm:$0xff]  ;;  %v34_v37 = vld [vmem:[%s845_s0 + $0xb0] sm:$0xff] }
  0x32   :  { %273 = vmatpush.msrb.mxu0 %v113_v22  ;;  %v124_v38 = vld [vmem:[%s846_s1 + $0x2a0] sm:$0xff]  ;;  %v33_v39 = vld [vmem:[%s845_s0 + $0xa8] sm:$0xff]  ;;  %v35_v40 = vld [vmem:[%s845_s0 + $0xb8] sm:$0xff] }
  0x33   :  { %391 = vmatpush.msrb.mxu3 %v113_v22  ;;  %302 = vmatpush.msrb.mxu1 %v129_v23  ;;  %v36_v41 = vld [vmem:[%s845_s0 + $0xc0] sm:$0xff]  ;;  %v107_v42 = vld [vmem:[%s846_s1 + $0x218] sm:$0xff]  ;;  %v106_v44 = vld [vmem:[%s846_s1 + $0x210] sm:$0xff] }
  0x34   :  { %274 = vmatpush.msrb.mxu0 %v112_v24  ;;  %202 = vmatmul.f32.gmra.mxu1 %v27_v25  ;;  %v123_v43 = vld [vmem:[%s846_s1 + $0x298] sm:$0xff]  ;;  %v122_v45 = vld [vmem:[%s846_s1 + $0x290] sm:$0xff]  ;;  %v105_v46 = vld [vmem:[%s846_s1 + $0x208] sm:$0xff] }
  0x35   :  { %392 = vmatpush.msrb.mxu3 %v112_v24  ;;  %303 = vmatpush.msrb.mxu1 %v128_v26  ;;  %v121_v47 = vld [vmem:[%s846_s1 + $0x288] sm:$0xff]  ;;  %v104_v48 = vld [vmem:[%s846_s1 + $0x200] sm:$0xff]  ;;  %v23_v51 = vld [vmem:[%s845_s0 + $0x58] sm:$0xff] }
  0x36   :  { %173 = vmatmul.f32.gmra.mxu0 %v26_v27  ;;  %231 = vmatmul.f32.gmra.mxu2 %v28_v28  ;;  %v120_v49 = vld [vmem:[%s846_s1 + $0x280] sm:$0xff]  ;;  %v17_v52 = vld [vmem:[%s845_s0 + $0x28] sm:$0xff]  ;;  %v18_v53 = vld [vmem:[%s845_s0 + $0x30] sm:$0xff] }
  0x37   :  { %260 = vmatmul.f32.gmra.mxu3 %v29_v29  ;;  %275 = vmatpush.msrb.mxu0 %v111_v30  ;;  %v16_v50 = vld [vmem:[%s845_s0 + $0x20] sm:$0xff]  ;;  %v30_v54 = vld [vmem:[%s845_s0 + $0x90] sm:$0xff]  ;;  %v25_v56 = vld [vmem:[%s845_s0 + $0x68] sm:$0xff] }
  0x38   :  { %393 = vmatpush.msrb.mxu3 %v111_v30  ;;  %304 = vmatpush.msrb.mxu1 %v127_v31  ;;  %v24_v55 = vld [vmem:[%s845_s0 + $0x60] sm:$0xff]  ;;  %v37_v57 = vld [vmem:[%s845_s0 + $0xc8] sm:$0xff]  ;;  %v31_v58 = vld [vmem:[%s845_s0 + $0x98] sm:$0xff] }
  0x39   :  { %276 = vmatpush.msrb.mxu0 %v110_v32  ;;  %v32_v59 = vld [vmem:[%s845_s0 + $0xa0] sm:$0xff]  ;;  %v38_v60 = vld [vmem:[%s845_s0 + $0xd0] sm:$0xff]  ;;  %v39_v61 = vld [vmem:[%s845_s0 + $0xd8] sm:$0xff]  ;;  %s438_s0 = smov [#allocation2]  }
  0x3a   :  { %394 = vmatpush.msrb.mxu3 %v110_v32  ;;  %305 = vmatpush.msrb.mxu1 %v126_v33  ;;  %s367_s8 = sshll.u32 %s438_s0, 4  ;;  %s368_s8 = int_to_ptr.vmem [resolvable:$true] %s367_s8 }
  0x3b   :  { %277 = vmatpush.msrb.mxu0 %v109_v34 }
  0x3c   :  { %395 = vmatpush.msrb.mxu3 %v109_v34  ;;  %306 = vmatpush.msrb.mxu1 %v125_v35 }
  0x3d   :  { %278 = vmatpush.msrb.mxu0 %v108_v36  ;;  %205 = vmatmul.f32.gmra.mxu1 %v34_v37 }
  0x3e   :  { %396 = vmatpush.msrb.mxu3 %v108_v36  ;;  %307 = vmatpush.msrb.mxu1 %v124_v38 }
  0x3f   :  { %176 = vmatmul.f32.gmra.mxu0 %v33_v39  ;;  %234 = vmatmul.f32.gmra.mxu2 %v35_v40 }
  0x40   :  { %263 = vmatmul.f32.gmra.mxu3 %v36_v41  ;;  %279 = vmatpush.msrb.mxu0 %v107_v42 }
  0x41   :  { %397 = vmatpush.msrb.mxu3 %v107_v42  ;;  %308 = vmatpush.msrb.mxu1 %v123_v43 }
  0x42   :  { %280 = vmatpush.msrb.mxu0 %v106_v44 }
  0x43   :  { %398 = vmatpush.msrb.mxu3 %v106_v44  ;;  %309 = vmatpush.msrb.mxu1 %v122_v45 }
  0x44   :  { %281 = vmatpush.msrb.mxu0 %v105_v46 }
  0x45   :  { %399 = vmatpush.msrb.mxu3 %v105_v46  ;;  %310 = vmatpush.msrb.mxu1 %v121_v47 }
  0x46   :  { %282 = vmatpush.msrb.mxu0 %v104_v48 }
  0x47   :  { %400 = vmatpush.msrb.mxu3 %v104_v48  ;;  %311 = vmatpush.msrb.mxu1 %v120_v49 }
  0x48   :  { %283 = vmatmul.f32.vlgmr.msrb.gmra.mxu0 %v16_v50  ;;  %286 = vmatmul.f32.vlgmr.msrb.gmra.mxu3 %v23_v51 }
  0x49   :  { %312 = vmatmul.f32.vlgmr.msrb.gmra.mxu1 %v17_v52  ;;  %381 = vmatmul.msk.f32.vlgmr.msrb.gmra.mxu2 %vm138_vm0, %v18_v53 }
  0x50   :  { %289 = vmatmul.f32.gmra.mxu3 %v30_v54 }
  0x51   :  { %315 = vmatmul.f32.gmra.mxu1 %v24_v55  ;;  %382 = vmatmul.msk.f32.gmra.mxu2 %vm138_vm0, %v25_v56 }
  0x58   :  { %292 = vmatmul.f32.gmra.mxu3 %v37_v57 }
  0x59   :  { %318 = vmatmul.f32.gmra.mxu1 %v31_v58  ;;  %383 = vmatmul.msk.f32.gmra.mxu2 %vm138_vm0, %v32_v59 }
  0x61   :  { %321 = vmatmul.f32.gmra.mxu1 %v38_v60  ;;  %384 = vmatmul.msk.f32.gmra.mxu2 %vm138_vm0, %v39_v61 }
  0x9f   :  { %v168_v62 = vpop.f32.mrf.mxu0 }
  0xa0   :  { %v197_v63 = vpop.f32.mrf.mxu1 }
  0xa1   :  { %v198_v12 = vadd.f32 %v197_v63, %v168_v62 }
  0xa7   :  { %v226_v0 = vpop.f32.mrf.mxu2  ;;  %v255_v1 = vpop.f32.mrf.mxu3 }
  0xa8   :  { %v200_v2 = vpop.f32.mrf.mxu1  ;;  %v227_v13 = vadd.f32 %v226_v0, %v198_v12 }
  0xaa   :  { %v171_v3 = vpop.f32.mrf.mxu0  ;;  %v256_v16 = vadd.f32 %v255_v1, %v227_v13 }
  0xab   :  { %v201_v17 = vadd.f32 %v200_v2, %v171_v3 }
  0xb0   :  { %v229_v4 = vpop.f32.mrf.mxu2 }
  0xb1   :  { %v258_v5 = vpop.f32.mrf.mxu3  ;;  %v203_v6 = vpop.f32.mrf.mxu1  ;;  %v230_v21 = vadd.f32 %v229_v4, %v201_v17 }
  0xb3   :  { %v174_v7 = vpop.f32.mrf.mxu0  ;;  %v259_v25 = vadd.f32 %v258_v5, %v230_v21 }
  0xb4   :  { %v204_v26 = vadd.f32 %v203_v6, %v174_v7 }
  0xb9   :  { %v232_v8 = vpop.f32.mrf.mxu2 }
  0xba   :  { %v261_v9 = vpop.f32.mrf.mxu3  ;;  %v206_v11 = vpop.f32.mrf.mxu1  ;;  %v233_v30 = vadd.f32 %v232_v8, %v204_v26 }
  0xbc   :  { %v177_v10 = vpop.f32.mrf.mxu0  ;;  %v262_v35 = vadd.f32 %v261_v9, %v233_v30 }
  0xbd   :  { %v207_v36 = vadd.f32 %v206_v11, %v177_v10 }
  0xc2   :  { %v235_v14 = vpop.f32.mrf.mxu2 }
  0xc3   :  { %v264_v15 = vpop.f32.mrf.mxu3  ;;  %v236_v40 = vadd.f32 %v235_v14, %v207_v36 }
  0xc5   :  { %v284_v18 = vpop.f32.mrf.mxu0  ;;  %v265_v45 = vadd.f32 %v264_v15, %v236_v40 }
  0xc6   :  { %v313_v19 = vpop.f32.mrf.mxu1  ;;  %v285_v20 = vadd.f32 %v284_v18, %v256_v16 }
  0xc8   :  { %v314_v22 = vadd.f32 %v313_v19, %v285_v20 }
  0xcb   :  { %v287_v23 = vpop.f32.mrf.mxu3 }
  0xcc   :  { %v342_v24 = vpop.f32.mrf.mxu2  ;;  %v288_v29 = vadd.f32 %v287_v23, %v259_v25 }
  0xcd   :  { %v343_v27 = vadd.f32 %v342_v24, %v314_v22 }
  0xce   :  { %v316_v28 = vpop.f32.mrf.mxu1 }
  0xcf   :  { %404 = vtanh.f32 %v343_v27  ;;  %v317_v31 = vadd.f32 %v316_v28, %v288_v29 }
  0xd3   :  { %v290_v32 = vpop.f32.mrf.mxu3 }
  0xd4   :  { %v345_v33 = vpop.f32.mrf.mxu2  ;;  %v291_v39 = vadd.f32 %v290_v32, %v262_v35 }
  0xd5   :  { %v405_v34 = vpop.eup %404  ;;  %v346_v37 = vadd.f32 %v345_v33, %v317_v31 }
  0xd6   :  { %359 = vst.msk [vmem:[#allocation2] sm:$0xff] %vm358_vm1, %v405_v34  ;;  %v319_v38 = vpop.f32.mrf.mxu1 }
  0xd7   :  { %406 = vtanh.f32 %v346_v37  ;;  %v320_v41 = vadd.f32 %v319_v38, %v291_v39 }
  0xdb   :  { %v293_v42 = vpop.f32.mrf.mxu3 }
  0xdc   :  { %v348_v43 = vpop.f32.mrf.mxu2  ;;  %v294_v47 = vadd.f32 %v293_v42, %v265_v45 }
  0xdd   :  { %v407_v44 = vpop.eup %406  ;;  %v349_v46 = vadd.f32 %v348_v43, %v320_v41 }
  0xde   :  { %360 = vst.msk [vmem:[#allocation2 + $0x8] sm:$0xff] %vm358_vm1, %v407_v44  ;;  %v322_v48 = vpop.f32.mrf.mxu1 }
  0xdf   :  { %408 = vtanh.f32 %v349_v46  ;;  %v323_v49 = vadd.f32 %v322_v48, %v294_v47 }
  0xe4   :  { %v351_v50 = vpop.f32.mrf.mxu2 }
  0xe5   :  { %v409_v51 = vpop.eup %408  ;;  %v352_v52 = vadd.f32 %v351_v50, %v323_v49 }
  0xe6   :  { %361 = vst.msk [vmem:[#allocation2 + $0x10] sm:$0xff] %vm358_vm1, %v409_v51 }
  0xe7   :  { %410 = vtanh.f32 %v352_v52 }
  0xed   :  { %v411_v53 = vpop.eup %410 }
  0xee   :  { %362 = vst.msk [vmem:[#allocation2 + $0x18] sm:$0xff] %vm358_vm1, %v411_v53 }
  0xef   :  { %375 = dma.vmem_to_hbm [thread:$0]  %s368_s8, 512, %s370_s11, [#allocation3], %s439_s12, %s439_s12, %s440_s13  }
  0xf0   :  { %436 = dma.done.wait [#allocation3], 512  }
  0xf1   :  { %437 = vsyncadd [#allocation3], 4294966784 }
  0xf2   :  { %380 = vsyncpa [#allocation3], 1 }

</bundles_post_ra>
